<compile_context>
chip_gen: v7x
topology: tpu7x:2x2x1
jax: 0.10.0
libtpu: 0.0.40
codegen_flags: <defaults>
</compile_context>

<pallas_src>
import functools

import jax
import jax.numpy as jnp
from jax.experimental import pallas as pl
from jax.experimental.pallas import tpu as pltpu

# ---------------- hyperparameters (small but MXU-aligned) ----------------
TIMESTEPS = 400
BETA_START = 1e-4
BETA_END = 0.02

B = 256            # batch (2 grid tiles -> exercises the cross-step reduction)
D = 128            # feature dim (lane axis, multiple of 128)
H = 256            # hidden dim of the synthetic denoiser MLP
B_TILE = 128       # batch rows per grid step (fills MXU rows on all gens)
NUM_CELL_TYPES = 4


# ---------------- Pallas kernel: fused noising + MLP + MSE ----------------
def _diffusion_loss_kernel(x_ref, noise_ref, sa_ref, so_ref, emb_ref,
                           w1_ref, b1_ref, w2_ref, b2_ref, loss_ref,
                           *, inv_n):
    i = pl.program_id(0)

    @pl.when(i == 0)
    def _init():
        loss_ref[0] = jnp.float32(0.0)

    x = x_ref[...]            # (B_TILE, D) f32
    noise = noise_ref[...]    # (B_TILE, D) f32
    sa = sa_ref[...]          # (B_TILE, 1) f32  sqrt_alphas_cumprod[t]
    so = so_ref[...]          # (B_TILE, 1) f32  sqrt_one_minus_alphas_cumprod[t]

    # q(x_t | x_0):  x_noisy = sqrt_alpha * x + sqrt(1 - alpha_bar) * noise
    # (kept in f32 on the VPU; only the MXU inputs are cast to bf16)
    x_noisy = sa * x + so * noise

    # synthetic denoiser MLP: bf16 MXU inputs, f32 accumulation
    h = jnp.dot(x_noisy.astype(jnp.bfloat16), w1_ref[...],
                preferred_element_type=jnp.float32)          # (B_TILE, H)
    h = jnp.maximum(h + emb_ref[...] + b1_ref[...], 0.0)
    pred = jnp.dot(h.astype(jnp.bfloat16), w2_ref[...],
                   preferred_element_type=jnp.float32)        # (B_TILE, D)
    pred = pred + b2_ref[...]

    # F.mse_loss(noise, pred_noise): accumulate partial SSE, mean at the end.
    diff = noise - pred
    loss_ref[0] += jnp.sum(diff * diff)

    @pl.when(i == pl.num_programs(0) - 1)
    def _finalize():
        loss_ref[0] = loss_ref[0] * inv_n     # divide by GLOBAL B * D


def diffusion_forward_pallas(x, noise, sqrt_alpha, sqrt_one_minus, emb,
                             w1, b1, w2, b2):
    """Fused forward of DiffusionModule given pre-gathered per-sample scalars."""
    batch, d = x.shape
    h = w1.shape[1]
    assert batch % B_TILE == 0, "batch must be a multiple of B_TILE"
    grid = (batch // B_TILE,)

    row = lambda cols: pl.BlockSpec((B_TILE, cols), lambda i: (i, 0))
    const = lambda shape: pl.BlockSpec(shape, lambda i: (0, 0))  # grid-invariant

    kernel = functools.partial(_diffusion_loss_kernel,
                               inv_n=1.0 / float(batch * d))

    loss = pl.pallas_call(
        kernel,
        grid=grid,
        in_specs=[row(d),            # x
                  row(d),            # noise
                  row(1),            # sqrt_alpha
                  row(1),            # sqrt_one_minus
                  row(h),            # conditioning embedding
                  const(w1.shape), const(b1.shape),
                  const(w2.shape), const(b2.shape)],
        # scalar loss lives in SMEM, resident across the whole grid
        out_specs=pl.BlockSpec(memory_space=pltpu.MemorySpace.SMEM),
        out_shape=jax.ShapeDtypeStruct((1,), jnp.float32),
        compiler_params=pltpu.CompilerParams(
            # batch axis is the loss-reduction axis (single SMEM accumulator)
            dimension_semantics=("arbitrary",)),
    )(x, noise, sqrt_alpha, sqrt_one_minus, emb, w1, b1, w2, b2)
    return loss[0]


# ---------------- module-level glue (schedules, params, RNG) ----------------
def make_schedule():
    betas = jnp.linspace(BETA_START, BETA_END, TIMESTEPS, dtype=jnp.float32)
    alphas = 1.0 - betas
    alphas_cumprod = jnp.cumprod(alphas, axis=0)
    return jnp.sqrt(alphas_cumprod), jnp.sqrt(1.0 - alphas_cumprod)


def make_params(key):
    k1, k2, k3, k4 = jax.random.split(key, 4)
    # weights in bf16 for the MXU; biases / embeddings stay f32 (VPU math)
    w1 = (jax.random.normal(k1, (D, H), jnp.float32) / jnp.sqrt(D)).astype(jnp.bfloat16)
    b1 = jnp.zeros((1, H), jnp.float32)
    w2 = (jax.random.normal(k2, (H, D), jnp.float32) / jnp.sqrt(H)).astype(jnp.bfloat16)
    b2 = jnp.zeros((1, D), jnp.float32)
    t_emb = jax.random.normal(k3, (TIMESTEPS, H), jnp.float32) * 0.02
    cell_emb = jax.random.normal(k4, (NUM_CELL_TYPES, H), jnp.float32) * 0.02
    return w1, b1, w2, b2, t_emb, cell_emb


def diffusion_module_forward(key, x, cell_types, params, schedule):
    """Mirrors DiffusionModule.forward(x, cell_types) -> scalar MSE loss."""
    w1, b1, w2, b2, t_emb, cell_emb = params
    sqrt_alphas_cumprod, sqrt_one_minus_alphas_cumprod = schedule

    k_t, k_n = jax.random.split(key)
    batch_size = x.shape[0]
    # t = torch.randint(0, timesteps, (batch,))
    t = jax.random.randint(k_t, (batch_size,), 0, TIMESTEPS)
    # noise = torch.randn_like(x)
    noise = jax.random.normal(k_n, x.shape, jnp.float32)

    # schedule gathers + .view(-1, 1) (kept f32 so noising stays full precision)
    sqrt_alpha = sqrt_alphas_cumprod[t].reshape(-1, 1)
    sqrt_one_minus = sqrt_one_minus_alphas_cumprod[t].reshape(-1, 1)

    # conditioning embeddings for the synthetic denoiser
    # TODO(synk): fold these per-row gathers into the kernel (scalar-prefetched
    # t / cell_types + in-kernel gather) once tables are large enough to matter.
    emb = t_emb[t] + cell_emb[cell_types]        # (B, H)

    return diffusion_forward_pallas(x, noise, sqrt_alpha, sqrt_one_minus, emb,
                                    w1, b1, w2, b2)


if __name__ == "__main__":
    key = jax.random.PRNGKey(0)
    k_param, k_x, k_cell, k_fwd = jax.random.split(key, 4)

    params = make_params(k_param)
    schedule = make_schedule()

    x = jax.random.normal(k_x, (B, D), jnp.float32)
    cell_types = jax.random.randint(k_cell, (B,), 0, NUM_CELL_TYPES)

    loss = diffusion_module_forward(k_fwd, x, cell_types, params, schedule)
    loss = jax.block_until_ready(loss)
    assert loss.shape == () and bool(jnp.isfinite(loss))
    print("KERNEL_OK")
</pallas_src>

<mosaic_0001>
module attributes {stable_mosaic.version = 11 : i64} {
  func.func @_diffusion_loss_kernel(%arg0: i32, %arg1: memref<128x128xf32, #tpu.memory_space<vmem>>, %arg2: memref<128x128xf32, #tpu.memory_space<vmem>>, %arg3: memref<128x1xf32, #tpu.memory_space<vmem>>, %arg4: memref<128x1xf32, #tpu.memory_space<vmem>>, %arg5: memref<128x256xf32, #tpu.memory_space<vmem>>, %arg6: memref<128x256xbf16, #tpu.memory_space<vmem>>, %arg7: memref<1x256xf32, #tpu.memory_space<vmem>>, %arg8: memref<256x128xbf16, #tpu.memory_space<vmem>>, %arg9: memref<1x128xf32, #tpu.memory_space<vmem>>, %arg10: memref<1xf32, #tpu.memory_space<smem>>) attributes {dimension_semantics = [#tpu.dimension_semantics<arbitrary>], iteration_bounds = array<i64: 2>, scalar_prefetch = 0 : i64, scratch_operands = 0 : i64, tpu.core_type = #tpu.core_type<tc>, window_params = [{transform_indices = @transform_0, window_bounds = array<i64: 128, 128>}, {transform_indices = @transform_1, window_bounds = array<i64: 128, 128>}, {transform_indices = @transform_2, window_bounds = array<i64: 128, 1>}, {transform_indices = @transform_3, window_bounds = array<i64: 128, 1>}, {transform_indices = @transform_4, window_bounds = array<i64: 128, 256>}, {pipeline_mode = #tpu.pipeline_mode<synchronous>, transform_indices = @transform_5, window_bounds = array<i64: 128, 256>}, {pipeline_mode = #tpu.pipeline_mode<synchronous>, transform_indices = @transform_6, window_bounds = array<i64: 1, 256>}, {pipeline_mode = #tpu.pipeline_mode<synchronous>, transform_indices = @transform_7, window_bounds = array<i64: 256, 128>}, {pipeline_mode = #tpu.pipeline_mode<synchronous>, transform_indices = @transform_8, window_bounds = array<i64: 1, 128>}, {transform_indices = @transform_9, window_bounds = array<i64: 1>}]} {
    %c0_i32 = arith.constant 0 : i32
    %0 = arith.cmpi eq, %arg0, %c0_i32 : i32
    %1 = arith.extui %0 : i1 to i32
    %c0_i32_0 = arith.constant 0 : i32
    %2 = arith.cmpi ne, %1, %c0_i32_0 : i32
    scf.if %2 {
      %cst_24 = arith.constant 0.000000e+00 : f32
      %c0_25 = arith.constant 0 : index
      %40 = memref.load %arg10[%c0_25] : memref<1xf32, #tpu.memory_space<smem>>
      memref.store %cst_24, %arg10[%c0_25] : memref<1xf32, #tpu.memory_space<smem>>
    } else {
    }
    %c0 = arith.constant 0 : index
    %c0_1 = arith.constant 0 : index
    %3 = vector.load %arg1[%c0, %c0_1] : memref<128x128xf32, #tpu.memory_space<vmem>>, vector<128x128xf32>
    %c0_2 = arith.constant 0 : index
    %c0_3 = arith.constant 0 : index
    %4 = vector.load %arg2[%c0_2, %c0_3] : memref<128x128xf32, #tpu.memory_space<vmem>>, vector<128x128xf32>
    %c0_4 = arith.constant 0 : index
    %c0_5 = arith.constant 0 : index
    %5 = vector.load %arg3[%c0_4, %c0_5] : memref<128x1xf32, #tpu.memory_space<vmem>>, vector<128x1xf32>
    %c0_6 = arith.constant 0 : index
    %c0_7 = arith.constant 0 : index
    %6 = vector.load %arg4[%c0_6, %c0_7] : memref<128x1xf32, #tpu.memory_space<vmem>>, vector<128x1xf32>
    %7 = vector.broadcast %5 : vector<128x1xf32> to vector<128x128xf32>
    %8 = arith.mulf %7, %3 : vector<128x128xf32>
    %9 = vector.broadcast %6 : vector<128x1xf32> to vector<128x128xf32>
    %10 = arith.mulf %9, %4 : vector<128x128xf32>
    %11 = arith.addf %8, %10 : vector<128x128xf32>
    %12 = arith.truncf %11 : vector<128x128xf32> to vector<128x128xbf16>
    %c0_8 = arith.constant 0 : index
    %c0_9 = arith.constant 0 : index
    %13 = vector.load %arg6[%c0_8, %c0_9] : memref<128x256xbf16, #tpu.memory_space<vmem>>, vector<128x256xbf16>
    %cst = arith.constant dense<0.000000e+00> : vector<128x256xf32>
    %14 = tpu.matmul %12, %13, %cst {dimension_numbers = #tpu.dot_dimension_numbers<[1], [0], [0], [1], [0, 0, 1, 1], [], []>} : vector<128x128xbf16>, vector<128x256xbf16>, vector<128x256xf32> -> vector<128x256xf32>
    %c0_10 = arith.constant 0 : index
    %c0_11 = arith.constant 0 : index
    %15 = vector.load %arg5[%c0_10, %c0_11] : memref<128x256xf32, #tpu.memory_space<vmem>>, vector<128x256xf32>
    %16 = arith.addf %14, %15 : vector<128x256xf32>
    %c0_12 = arith.constant 0 : index
    %c0_13 = arith.constant 0 : index
    %17 = vector.load %arg7[%c0_12, %c0_13] : memref<1x256xf32, #tpu.memory_space<vmem>>, vector<1x256xf32>
    %18 = vector.broadcast %17 : vector<1x256xf32> to vector<128x256xf32>
    %19 = arith.addf %16, %18 : vector<128x256xf32>
    %cst_14 = arith.constant 0.000000e+00 : f32
    %20 = vector.broadcast %cst_14 : f32 to vector<128x256xf32>
    %21 = arith.maximumf %19, %20 : vector<128x256xf32>
    %22 = arith.truncf %21 : vector<128x256xf32> to vector<128x256xbf16>
    %c0_15 = arith.constant 0 : index
    %c0_16 = arith.constant 0 : index
    %23 = vector.load %arg8[%c0_15, %c0_16] : memref<256x128xbf16, #tpu.memory_space<vmem>>, vector<256x128xbf16>
    %cst_17 = arith.constant dense<0.000000e+00> : vector<128x128xf32>
    %24 = tpu.matmul %22, %23, %cst_17 {dimension_numbers = #tpu.dot_dimension_numbers<[1], [0], [0], [1], [0, 0, 1, 1], [], []>} : vector<128x256xbf16>, vector<256x128xbf16>, vector<128x128xf32> -> vector<128x128xf32>
    %c0_18 = arith.constant 0 : index
    %c0_19 = arith.constant 0 : index
    %25 = vector.load %arg9[%c0_18, %c0_19] : memref<1x128xf32, #tpu.memory_space<vmem>>, vector<1x128xf32>
    %26 = vector.broadcast %25 : vector<1x128xf32> to vector<128x128xf32>
    %27 = arith.addf %24, %26 : vector<128x128xf32>
    %28 = arith.subf %4, %27 : vector<128x128xf32>
    %c0_20 = arith.constant 0 : index
    %29 = memref.load %arg10[%c0_20] : memref<1xf32, #tpu.memory_space<smem>>
    %30 = arith.mulf %28, %28 : vector<128x128xf32>
    %31 = vector.shape_cast %30 : vector<128x128xf32> to vector<1x128x128xf32>
    %cst_21 = arith.constant dense<0.000000e+00> : vector<1xf32>
    %32 = vector.multi_reduction <add>, %31, %cst_21 [1, 2] : vector<1x128x128xf32> to vector<1xf32>
    %33 = vector.shape_cast %32 : vector<1xf32> to vector<1x1x1xf32>
    %34 = vector.extract %33[0, 0, 0] : f32 from vector<1x1x1xf32>
    %35 = arith.addf %29, %34 : f32
    %c0_22 = arith.constant 0 : index
    %36 = memref.load %arg10[%c0_22] : memref<1xf32, #tpu.memory_space<smem>>
    memref.store %35, %arg10[%c0_22] : memref<1xf32, #tpu.memory_space<smem>>
    %c1_i32 = arith.constant 1 : i32
    %37 = arith.cmpi eq, %arg0, %c1_i32 : i32
    %38 = arith.extui %37 : i1 to i32
    %c0_i32_23 = arith.constant 0 : i32
    %39 = arith.cmpi ne, %38, %c0_i32_23 : i32
    scf.if %39 {
      %c0_24 = arith.constant 0 : index
      %40 = memref.load %arg10[%c0_24] : memref<1xf32, #tpu.memory_space<smem>>
      %cst_25 = arith.constant 3.05175781E-5 : f32
      %41 = arith.mulf %40, %cst_25 : f32
      %c0_26 = arith.constant 0 : index
      %42 = memref.load %arg10[%c0_26] : memref<1xf32, #tpu.memory_space<smem>>
      memref.store %41, %arg10[%c0_26] : memref<1xf32, #tpu.memory_space<smem>>
    } else {
    }
    return
  }
  func.func @transform_0(%arg0: i32) -> (i32, i32) {
    %c0_i32 = arith.constant 0 : i32
    %c0_i32_0 = arith.constant 0 : i32
    return %arg0, %c0_i32 : i32, i32
  }
  func.func @transform_1(%arg0: i32) -> (i32, i32) {
    %c0_i32 = arith.constant 0 : i32
    %c0_i32_0 = arith.constant 0 : i32
    return %arg0, %c0_i32 : i32, i32
  }
  func.func @transform_2(%arg0: i32) -> (i32, i32) {
    %c0_i32 = arith.constant 0 : i32
    %c0_i32_0 = arith.constant 0 : i32
    return %arg0, %c0_i32 : i32, i32
  }
  func.func @transform_3(%arg0: i32) -> (i32, i32) {
    %c0_i32 = arith.constant 0 : i32
    %c0_i32_0 = arith.constant 0 : i32
    return %arg0, %c0_i32 : i32, i32
  }
  func.func @transform_4(%arg0: i32) -> (i32, i32) {
    %c0_i32 = arith.constant 0 : i32
    %c0_i32_0 = arith.constant 0 : i32
    return %arg0, %c0_i32 : i32, i32
  }
  func.func @transform_5(%arg0: i32) -> (i32, i32) {
    %c0_i32 = arith.constant 0 : i32
    %c0_i32_0 = arith.constant 0 : i32
    %c0_i32_1 = arith.constant 0 : i32
    return %c0_i32, %c0_i32_0 : i32, i32
  }
  func.func @transform_6(%arg0: i32) -> (i32, i32) {
    %c0_i32 = arith.constant 0 : i32
    %c0_i32_0 = arith.constant 0 : i32
    %c0_i32_1 = arith.constant 0 : i32
    return %c0_i32, %c0_i32_0 : i32, i32
  }
  func.func @transform_7(%arg0: i32) -> (i32, i32) {
    %c0_i32 = arith.constant 0 : i32
    %c0_i32_0 = arith.constant 0 : i32
    %c0_i32_1 = arith.constant 0 : i32
    return %c0_i32, %c0_i32_0 : i32, i32
  }
  func.func @transform_8(%arg0: i32) -> (i32, i32) {
    %c0_i32 = arith.constant 0 : i32
    %c0_i32_0 = arith.constant 0 : i32
    %c0_i32_1 = arith.constant 0 : i32
    return %c0_i32, %c0_i32_0 : i32, i32
  }
  func.func @transform_9(%arg0: i32) -> i32 {
    %c0_i32 = arith.constant 0 : i32
    %c0_i32_0 = arith.constant 0 : i32
    return %c0_i32 : i32
  }
}

</mosaic_0001>

<bundles_post_ra>
// kernel: tpu_custom_call.1
= control target key start
LH: loop header
LB: loop body
LE: loop exit
PB: predicated region body
PF: predicated region fallthrough
CT: control target
= control target key end

     0   :  { %s2535_s0 = inlined_call_operand.hbm [shape: f32[256,128], index: 0, kind: input, shape index: {}]   ;;  %s2536_s1 = inlined_call_operand.hbm [shape: f32[256,128], index: 1, kind: input, shape index: {}]   ;;  %s2537_s2 = inlined_call_operand.vmem [shape: f32[256,1], index: 2, kind: input, shape index: {}]   ;;  %s2538_s3 = inlined_call_operand.vmem [shape: f32[256,1], index: 3, kind: input, shape index: {}]   ;;  %s2539_s4 = inlined_call_operand.vmem [shape: f32[256,256], index: 4, kind: input, shape index: {}]   ;;  %s2540_s5 = inlined_call_operand.hbm [shape: bf16[128,256], index: 5, kind: input, shape index: {}]   ;;  %s2541_s6 = inlined_call_operand.vmem [shape: f32[1,256], index: 6, kind: input, shape index: {}]   ;;  %s2542_s7 = inlined_call_operand.hbm [shape: bf16[256,128], index: 7, kind: input, shape index: {}]   ;;  %s2543_s8 = inlined_call_operand.vmem [shape: f32[1,128], index: 8, kind: input, shape index: {}]   ;;  %s2544_s9 = inlined_call_operand.hbm [shape: f32[1], index: 9, kind: output, shape index: {}]  }
   0x1   :  { %2553 = sst [smem:[#allocation18_spill]] %s2535_s0 }
   0x2   :  { %2554 = sst [smem:[#allocation19_spill]] %s2540_s5 }
   0x3   :  { %2555 = sst [smem:[#allocation20_spill]] %s2542_s7 }
   0x4   :  { %14 = vsyncpa [#allocation3], 0 }
   0x5   :  { %16 = vsyncpa [#allocation3 + $0x1], 0 }
   0x6   :  { %17 = vsyncpa [#allocation6], 0 }
   0x7   :  { %19 = vsyncpa [#allocation6 + $0x1], 0 }
   0x8   :  { %20 = vsyncpa [#allocation9], 0 }
   0x9   :  { %21 = vsyncpa [#allocation4], 0  ;;  %s2030_s30 = smov 0   ;;  %s2032_s10 = smov 0  }
   0xa   :  { %s2034_s11 = smov 0   ;;  %s2036_s12 = smov 0  }
   0xb LB: > { %2556 = sst [smem:[#allocation16_spill]] %s1963_s11  ;;  %s2049_s13 = sadd.s32 4294967295, %s1967_s12   ;;  %s1967_s12 = sphi %s2036_s12, %s2578_s12   ;;  %s1963_s11 = sphi %s2034_s11, %s2575_s11   ;;  %s1959_s10 = sphi %s2032_s10, %s2577_s10   ;;  %s1955_s30 = sphi %s2030_s30, %s2576_s30  }
   0xc   : > { %p47_p0 = scmp.ne.s32.totalorder %s1959_s10, %s1955_s30  ;;  %p2545_p1 = scmp.eq.s32.totalorder %s2049_s13, 0 }
   0xd   : > { %p1533_p2 = scmp.ge.s32.totalorder %s1967_s12, 1  ;;  %p267_p3 = scmp.lt.s32.totalorder %s1967_s12, 3 }
   0xe   : > { %p2057_p4 = por %p2545_p1, %p47_p0  ;;  %s1969_s16 = smov [#allocation7]  }
   0xf   : > { %p2061_p5 = pnand %p1533_p2, %p267_p3  ;;  %s279_s17 = sshll.u32 %s1969_s16, 4  ;;  %s280_s17 = int_to_ptr.vmem [resolvable:$true] %s279_s17 }
  0x10   : > { %s2557_s14 = scalar_select %p2057_p4, 1, 0 }
  0x11   : > { %s2558_s15 = scalar_select %p2061_p5, 1, 0 }
  0x12   : > { %p1683_p6 = pneg %p2061_p5  ;;  %s1970_s19 = smov [#allocation8]  }
  0x13   : > { %s295_s20 = sshll.u32 %s1970_s19, 4  ;;  %s2560_s5 = sld [smem:[#allocation19_spill]]  ;;  %s2073_s20 = int_to_ptr.vmem [resolvable:$true] %s295_s20 }
  0x14   : > { %p2069_p7 = pnand %p1683_p6, %p2545_p1 }
  0x16   : > { %p1791_p9 = pneg %p2069_p7 }
  0x19   : > { %s1789_s23 = scalar_lea.hbm %s2560_s5, 2048 }
  0x1a   : > { %p1790_p8 = scmp.ne.s32.totalorder %s2560_s5, %s1789_s23  ;;  %p1796_p12 = scmp.lt.u32.totalorder %s1789_s23, %s2560_s5 }
  0x1c   : > { %p1792_p10 = pnand %p1791_p9, %p1790_p8 }
  0x1e   : > { %p1793_p11 = pneg %p1792_p10 }
  0x20   : > { %p1798_p13 = pnand %p1796_p12, %p1793_p11 }
  0x22   : > { %1801 = shalt.err (!%p1798_p13)
}
  0x23   : > { %s1802_s28 = scalar_lea.vmem %s280_s17, 2048  ;;  %p1810_p6 = scmp.lt.s32.totalorder %s280_s17, %s280_s17 }
  0x24   : > { %p1803_p0 = scmp.ne.s32.totalorder %s280_s17, %s1802_s28  ;;  %p1811_p1 = scmp.lt.s32.totalorder %s1802_s28, %s1802_s28 }
  0x26   : > { %p1805_p2 = pnand %p1803_p0, %p1791_p9  ;;  %p1812_p4 = por %p1811_p1, %p1810_p6 }
  0x28   : > { %p1806_p3 = pneg %p1805_p2 }
  0x2a   : > { %p1813_p5 = pnand %p1812_p4, %p1806_p3 }
  0x2c   : > { %1816 = shalt.err (!%p1813_p5)
}
  0x2d   : > { %s2548_s29 = smov 128   ;;  %s2550_s30 = smov 8  }
  0x2e   : > { %1686 = dma.hbm_to_vmem [thread:$0]  (!%p2069_p7), %s2560_s5, 2048, %s280_s17, [#allocation6], %s2548_s29, %s2548_s29, %s2550_s30  }
  0x2f   : > { %s2561_s7 = sld [smem:[#allocation20_spill]] }
  0x35   : > { %s1817_s23 = scalar_lea.hbm %s2561_s7, 2048 }
  0x36   : > { %p1818_p1 = scmp.ne.s32.totalorder %s2561_s7, %s1817_s23  ;;  %p1824_p8 = scmp.lt.u32.totalorder %s1817_s23, %s2561_s7 }
  0x38   : > { %p1820_p4 = pnand %p1818_p1, %p1791_p9 }
  0x3a   : > { %p1821_p5 = pneg %p1820_p4 }
  0x3c   : > { %p1826_p10 = pnand %p1824_p8, %p1821_p5 }
  0x3e   : > { %1829 = shalt.err (!%p1826_p10)
}
  0x3f   : > { %s1830_s17 = scalar_lea.vmem %s2073_s20, 2048  ;;  %p1838_p0 = scmp.lt.s32.totalorder %s2073_s20, %s2073_s20 }
  0x40   : > { %p1831_p11 = scmp.ne.s32.totalorder %s2073_s20, %s1830_s17  ;;  %p1839_p2 = scmp.lt.s32.totalorder %s1830_s17, %s1830_s17 }
  0x42   : > { %p1833_p12 = pnand %p1831_p11, %p1791_p9  ;;  %p1840_p3 = por %p1839_p2, %p1838_p0 }
  0x44   : > { %p1834_p13 = pneg %p1833_p12 }
  0x46   : > { %p1841_p6 = pnand %p1840_p3, %p1834_p13 }
  0x48   : > { %1844 = shalt.err (!%p1841_p6)
}
  0x49   : > { %s1973_s28 = smov 64   ;;  %s1974_s16 = smov 4  }
  0x4a   : > { %1689 = dma.hbm_to_vmem [thread:$0]  (!%p2069_p7), %s2561_s7, 2048, %s2073_s20, [#allocation9], %s1973_s28, %s1973_s28, %s1974_s16  }
  0x4b   : > { %s2126_s22 = sadd.s32 1, %s1967_s12   ;;  %s34_s24 = sadd.s32 1, %s1963_s11 }
  0x4c   : > { %s31_s23 = ssub.s32 %s1967_s12, %s2126_s22  ;;  %p41_p1 = scmp.ne.s32.totalorder %s1963_s11, %s1959_s10 }
  0x4d   : > { %p32_p9 = scmp.eq.s32.totalorder %s31_s23, 0  ;;  %p42_p4 = scmp.eq.s32.totalorder %s1967_s12, 0 }
  0x4e   : > { %p1699_p8 = scmp.lt.s32.totalorder %s1967_s12, 2  ;;  %s312_s26 = sand.u32 1, %s1963_s11  }
  0x4f   : > { %s2135_s25 = scalar_select %p32_p9, %s1963_s11, %s34_s24  }
  0x50   : > { %p43_p5 = por %p42_p4, %p41_p1  ;;  %s1594_s27 = sshll.u32 %s1967_s12, 11 }
  0x51   : > { %2562 = sst [smem:[#allocation17_spill]] %s2135_s25  ;;  %s2140_s17 = sshll.u32 %s312_s26, 7 }
  0x52   : > { %s2563_s0 = sld [smem:[#allocation18_spill]]  ;;  %s316_s28 = scalar_lea.vmem [#allocation2], %s2140_s17 }
  0x53   : > { %s323_s16 = sshll.u32 %s316_s28, 4  ;;  %p2148_p7 = pnand %p1699_p8, %p43_p5  ;;  %s2152_s16 = int_to_ptr.vmem [resolvable:$true] %s323_s16 }
  0x54   : > { %s2157_s29 = scalar_lea.hbm %s2536_s1, %s1594_s27  ;;  %s2159_s24 = scalar_lea.sflag [#allocation3], %s312_s26 }
  0x55   : > { %p1847_p11 = pneg %p2148_p7 }
  0x58   : > { %s2145_s20 = scalar_lea.hbm %s2563_s0, %s1594_s27  ;;  %s1850_s5 = scalar_lea.hbm %s2563_s0, 4096 }
  0x59   : > { %s1845_s18 = scalar_lea.hbm %s2145_s20, 2048  ;;  %p1851_p0 = scmp.lt.u32.totalorder %s2145_s20, %s2563_s0 }
  0x5a   : > { %p1846_p10 = scmp.ne.s32.totalorder %s2145_s20, %s1845_s18  ;;  %p1852_p2 = scmp.lt.u32.totalorder %s1850_s5, %s1845_s18 }
  0x5b   : > { %p1854_p6 = scmp.lt.u32.totalorder %s1845_s18, %s2145_s20 }
  0x5c   : > { %p1848_p12 = pnand %p1847_p11, %p1846_p10  ;;  %p1853_p3 = por %p1852_p2, %p1851_p0 }
  0x5e   : > { %p1849_p13 = pneg %p1848_p12  ;;  %p1855_p9 = por %p1854_p6, %p1853_p3 }
  0x60   : > { %p1856_p1 = pnand %p1855_p9, %p1849_p13 }
  0x62   : > { %1859 = shalt.err (!%p1856_p1)
}
  0x63   : > { %s1860_s26 = scalar_lea.vmem %s2152_s16, 2048  ;;  %s1975_s30 = smov [#allocation2]  }
  0x64   : > { %p1861_p4 = scmp.ne.s32.totalorder %s2152_s16, %s1860_s26  ;;  %s1865_s27 = sshll.u32 %s1975_s30, 4  ;;  %s1866_s27 = int_to_ptr.vmem [resolvable:$false] %s1865_s27 }
  0x65   : > { %s1867_s7 = scalar_lea.vmem %s1866_s27, 4096  ;;  %p1868_p10 = scmp.lt.s32.totalorder %s2152_s16, %s1866_s27 }
  0x66   : > { %p1863_p5 = pnand %p1861_p4, %p1847_p11  ;;  %p1869_p12 = scmp.lt.s32.totalorder %s1867_s7, %s1860_s26 }
  0x68   : > { %p1864_p8 = pneg %p1863_p5  ;;  %p1870_p0 = por %p1869_p12, %p1868_p10 }
  0x6a   : > { %p1871_p2 = pnand %p1870_p0, %p1864_p8 }
  0x6c   : > { %1874 = shalt.err (!%p1871_p2)
}
  0x6d   : > { %s2565_s5 = smov 8   ;;  %s2566_s25 = smov 128  }
  0x6e   : > { %1693 = dma.hbm_to_vmem [thread:$0]  (!%p2148_p7), %s2145_s20, 2048, %s2152_s16, %s2159_s24, %s2566_s25, %s2566_s25, %s2565_s5  }
  0x6f   : > { %s337_s21 = scalar_lea.vmem [#allocation5], %s2140_s17  ;;  %s333_s18 = sand.u32 1, %s1967_s12  }
  0x70   : > { %s344_s23 = sshll.u32 %s337_s21, 4  ;;  %s2194_s28 = scalar_lea.sflag [#allocation6], %s333_s18  ;;  %s2192_s23 = int_to_ptr.vmem [resolvable:$true] %s344_s23 }
  0x71   : > { %s1875_s26 = scalar_lea.hbm %s2157_s29, 2048  ;;  %s1880_s7 = scalar_lea.hbm %s2536_s1, 4096 }
  0x72   : > { %p1876_p13 = scmp.ne.s32.totalorder %s2157_s29, %s1875_s26  ;;  %p1881_p9 = scmp.lt.u32.totalorder %s2157_s29, %s2536_s1 }
  0x73   : > { %p1882_p1 = scmp.lt.u32.totalorder %s1880_s7, %s1875_s26  ;;  %p1884_p5 = scmp.lt.u32.totalorder %s1875_s26, %s2157_s29 }
  0x74   : > { %p1878_p3 = pnand %p1876_p13, %p1847_p11 }
  0x75   : > { %p1883_p4 = por %p1882_p1, %p1881_p9 }
  0x76   : > { %p1879_p6 = pneg %p1878_p3 }
  0x77   : > { %p1885_p8 = por %p1884_p5, %p1883_p4 }
  0x79   : > { %p1886_p10 = pnand %p1885_p8, %p1879_p6 }
  0x7b   : > { %1889 = shalt.err (!%p1886_p10)
}
  0x7c   : > { %s1890_s12 = scalar_lea.vmem %s2192_s23, 2048  ;;  %s1976_s17 = smov [#allocation5]  }
  0x7d   : > { %p1891_p12 = scmp.ne.s32.totalorder %s2192_s23, %s1890_s12  ;;  %s1895_s20 = sshll.u32 %s1976_s17, 4  ;;  %s1896_s20 = int_to_ptr.vmem [resolvable:$false] %s1895_s20 }
  0x7e   : > { %s1897_s0 = scalar_lea.vmem %s1896_s20, 4096  ;;  %p1898_p13 = scmp.lt.s32.totalorder %s2192_s23, %s1896_s20 }
  0x7f   : > { %p1893_p0 = pnand %p1891_p12, %p1847_p11  ;;  %p1899_p3 = scmp.lt.s32.totalorder %s1897_s0, %s1890_s12 }
  0x81   : > { %p1894_p2 = pneg %p1893_p0  ;;  %p1900_p9 = por %p1899_p3, %p1898_p13 }
  0x83   : > { %p1901_p1 = pnand %p1900_p9, %p1894_p2 }
  0x85   : > { %1904 = shalt.err (!%p1901_p1)
}
  0x86   : > { %1696 = dma.hbm_to_vmem [thread:$0]  (!%p2148_p7), %s2157_s29, 2048, %s2192_s23, %s2194_s28, %s2566_s25, %s2566_s25, %s2565_s5  }
  0x87   : > { %p2567_p11 = scmp.ne.s32.totalorder %s2558_s15, 0 }
  0x88   : > { %s386_s11 = sand.u32 (!%p2567_p11), 1, %s1959_s10   ;;  %p2568_p6 = scmp.ne.s32.totalorder (!%p2567_p11), %s2557_s14, 0 }
  0x89   : > { %384 = sbr.rel (%p2567_p11) target bundleno = 1021 (0x3fd), region = 56  ;;  %s1544_s16 = sshll.u32 (!%p2567_p11), %s386_s11, 7 }
  0x8a   : > { %s387_s24 = scalar_lea.sflag (!%p2567_p11), [#allocation3], %s386_s11  ;;  %s2226_s21 = scalar_lea.vmem (!%p2567_p11), [#allocation2], %s1544_s16 }
  0x90   : > { %1934 = dma.done.wait (%p2568_p6), %s387_s24, 2048  }
  0x91   : > { %1936 = vsyncadd (%p2568_p6), %s387_s24, 4294965248  ;;  %s395_s19 = sand.u32 1, %s2049_s13   ;;  %s2233_s29 = scalar_lea.vmem [#allocation5], %s1544_s16 }
  0x92   : > { %s396_s18 = scalar_lea.sflag [#allocation6], %s395_s19 }
  0x93   : > { %1938 = dma.done.wait (%p2568_p6), %s396_s18, 2048  }
  0x94   : > { %1940 = vsyncadd (%p2568_p6), %s396_s18, 4294965248  ;;  %p2569_p7 = scmp.eq.s32.totalorder %s2049_s13, 0 }
  0x96   : > { %1942 = dma.done.wait (%p2569_p7), [#allocation6], 2048   ;;  %p2570_p4 = pmov %p2569_p7 }
  0x98   : > { %1944 = vsyncadd (%p2570_p4), [#allocation6], 4294965248  ;;  %p2571_p5 = pmov %p2570_p4 }
  0x99   : > { %p2572_p8 = pmov %p2570_p4 }
  0x9a   : > { %1946 = dma.done.wait (%p2571_p5), [#allocation9], 2048  }
  0x9b   : > { %1948 = vsyncadd (%p2572_p8), [#allocation9], 4294965248  ;;  %s1548_s15 = sshll.u32 %s2049_s13, 4  ;;  %v1977_v0 = vmov 0   ;;  %v1749_v9 = vld [vmem:[#allocation7 + $0x4] ss:$8 sps:$4 sm:$0xff]   ;;  %p2573_p12 = pmov %p2570_p4 }
  0x9c   : > { %1748 = vset.pattern.permute.xlu1 %v1977_v0  ;;  %1747 = vset.pattern.permute.xlu0 %v1977_v0  ;;  %p461_p10 = scmp.lt.s32.totalorder %s1548_s15, 31  ;;  %v1751_v10 = vld [vmem:[#allocation7] ss:$8 sps:$4 sm:$0xff]   ;;  %v1752_v11 = vld [vmem:[#allocation7 + $0x14] ss:$8 sps:$4 sm:$0xff]   ;;  %s1978_s24 = smov 0.0  }
  0x9d   : > { %926 = vmatprep.mubr.bf16.mxu0 %v1977_v0  ;;  %894 = vmatprep.subr.bf16.mxu0 %v1749_v9  ;;  %v1754_v13 = vld [vmem:[#allocation7 + $0x10] ss:$8 sps:$4 sm:$0xff]   ;;  %v1755_v15 = vld [vmem:[#allocation7 + $0x24] ss:$8 sps:$4 sm:$0xff]   ;;  %v1757_v18 = vld [vmem:[#allocation7 + $0x20] ss:$8 sps:$4 sm:$0xff]  }
  0x9e   : > { %s2580_s15 = smov (!%p461_p10, %s1548_s15), 31  ;;  %895 = vmatpush1.bf16.msra.mxu0 %v1751_v10  ;;  %v1758_v19 = vld [vmem:[#allocation7 + $0x34] ss:$8 sps:$4 sm:$0xff]   ;;  %v1760_v21 = vld [vmem:[#allocation7 + $0x30] ss:$8 sps:$4 sm:$0xff]   ;;  %v1773_v49 = vld [vmem:[#allocation8 + $0x40] sm:$0xff]  }
  0x9f   : > { %s1549_s14 = sshll.u32 %s2580_s15, 3  ;;  %896 = vmatprep.subr.bf16.mxu0 %v1752_v11  ;;  %v1761_v23 = vld [vmem:[#allocation7 + $0x44] ss:$8 sps:$4 sm:$0xff]   ;;  %v1763_v26 = vld [vmem:[#allocation7 + $0x40] ss:$8 sps:$4 sm:$0xff]   ;;  %1597 = vmatprep.subr.bf16.mxu1 %v1773_v49  ;;  %v1777_v53 = vld [vmem:[#allocation8 + $0x50] sm:$0xff]  }
  0xa0   : > { %s2257_s23 = scalar_lea.vmem %s2538_s3, %s1549_s14  ;;  %s2263_s30 = scalar_lea.vmem %s2537_s2, %s1549_s14  ;;  %v1764_v27 = vld [vmem:[#allocation7 + $0x54] ss:$8 sps:$4 sm:$0xff]   ;;  %v1766_v29 = vld [vmem:[#allocation7 + $0x50] ss:$8 sps:$4 sm:$0xff]   ;;  %v1767_v31 = vld [vmem:[#allocation7 + $0x64] ss:$8 sps:$4 sm:$0xff]  }
  0xa1   : > { %v534_v1 = vld [vmem:[%s2257_s23] sm:$0xff]  ;;  %v535_v3 = vld [vmem:[%s2257_s23 + $0x8] sm:$0xff]  ;;  %v521_v5 = vld [vmem:[%s2263_s30 + $0x18] sm:$0xff]  ;;  %s1596_s27 = sshll.u32 %s2580_s15, 4  ;;  %1676 = sst [smem:[#allocation10]] (%p2573_p12), %s1978_s24 }
  0xa2   : > { %648 = vperm.xlu1 %1748, %v534_v1   ;;  %v518_v2 = vld [vmem:[%s2263_s30] sm:$0xff]  ;;  %v519_v4 = vld [vmem:[%s2263_s30 + $0x8] sm:$0xff]  ;;  %v520_v6 = vld [vmem:[%s2263_s30 + $0x10] sm:$0xff]  ;;  %897 = vmatpush1.bf16.msra.mxu0 %v1754_v13  ;;  %s2387_s17 = scalar_lea.vmem %s2539_s4, %s1596_s27  ;;  %p1703_p0 = scmp.eq.s32.totalorder %s2049_s13, 1 }
  0xa3   : > { %552 = vperm.xlu0 %1747, %v518_v2   ;;  %v537_v7 = vld [vmem:[%s2257_s23 + $0x18] sm:$0xff]  ;;  %v536_v8 = vld [vmem:[%s2257_s23 + $0x10] sm:$0xff]  ;;  %v523_v12 = vld [vmem:[%s2263_s30 + $0x28] sm:$0xff]  ;;  %898 = vmatprep.subr.bf16.mxu0 %v1755_v15  ;;  %s1905_s5 = scalar_lea.hbm %s2544_s9, 16 }
  0xa4   : > { %v522_v14 = vld [vmem:[%s2263_s30 + $0x20] sm:$0xff]  ;;  %v539_v16 = vld [vmem:[%s2257_s23 + $0x28] sm:$0xff]  ;;  %v525_v20 = vld [vmem:[%s2263_s30 + $0x38] sm:$0xff]  ;;  %p1906_p2 = scmp.ne.s32.totalorder %s2544_s9, %s1905_s5  ;;  %p1911_p9 = scmp.lt.u32.totalorder %s1905_s5, %s2544_s9 }
  0xa5   : > { %v538_v17 = vld [vmem:[%s2257_s23 + $0x20] sm:$0xff]  ;;  %v524_v22 = vld [vmem:[%s2263_s30 + $0x30] sm:$0xff]  ;;  %v541_v24 = vld [vmem:[%s2257_s23 + $0x38] sm:$0xff] }
  0xa6   : > { %653 = vperm.xlu1 %1748, %v535_v3   ;;  %899 = vmatpush1.bf16.msra.mxu0 %v1757_v18  ;;  %v540_v25 = vld [vmem:[%s2257_s23 + $0x30] sm:$0xff]  ;;  %v527_v28 = vld [vmem:[%s2263_s30 + $0x48] sm:$0xff]  ;;  %v526_v30 = vld [vmem:[%s2263_s30 + $0x40] sm:$0xff]  ;;  %p1907_p13 = pnand %p1906_p2, %p1703_p0 }
  0xa7   : > { %557 = vperm.xlu0 %1747, %v519_v4   ;;  %900 = vmatprep.subr.bf16.mxu0 %v1758_v19  ;;  %v543_v32 = vld [vmem:[%s2257_s23 + $0x48] sm:$0xff]  ;;  %v542_v34 = vld [vmem:[%s2257_s23 + $0x40] sm:$0xff]  ;;  %v1770_v35 = vld [vmem:[#allocation7 + $0x74] ss:$8 sps:$4 sm:$0xff]  }
  0xa8   : > { %v1769_v33 = vld [vmem:[#allocation7 + $0x60] ss:$8 sps:$4 sm:$0xff]   ;;  %v529_v36 = vld [vmem:[%s2263_s30 + $0x58] sm:$0xff]  ;;  %v528_v38 = vld [vmem:[%s2263_s30 + $0x50] sm:$0xff]  ;;  %p1908_p3 = pneg %p1907_p13 }
  0xa9   : > { %v1772_v37 = vld [vmem:[#allocation7 + $0x70] ss:$8 sps:$4 sm:$0xff]   ;;  %v531_v41 = vld [vmem:[%s2263_s30 + $0x68] sm:$0xff]  ;;  %v530_v42 = vld [vmem:[%s2263_s30 + $0x60] sm:$0xff] }
  0xaa   : > { %567 = vperm.xlu1 %1748, %v521_v5   ;;  %901 = vmatpush1.bf16.msra.mxu0 %v1760_v21  ;;  %v545_v39 = vld [vmem:[%s2257_s23 + $0x58] sm:$0xff]  ;;  %v544_v40 = vld [vmem:[%s2257_s23 + $0x50] sm:$0xff]  ;;  %v547_v43 = vld [vmem:[%s2257_s23 + $0x68] sm:$0xff]  ;;  %p1913_p1 = pnand %p1911_p9, %p1908_p3 }
  0xab   : > { %562 = vperm.xlu0 %1747, %v520_v6   ;;  %902 = vmatprep.subr.bf16.mxu0 %v1761_v23  ;;  %v546_v44 = vld [vmem:[%s2257_s23 + $0x60] sm:$0xff]  ;;  %v533_v45 = vld [vmem:[%s2263_s30 + $0x78] sm:$0xff]  ;;  %v532_v46 = vld [vmem:[%s2263_s30 + $0x70] sm:$0xff] }
  0xac   : > { %v549_v47 = vld [vmem:[%s2257_s23 + $0x78] sm:$0xff]  ;;  %v548_v48 = vld [vmem:[%s2257_s23 + $0x70] sm:$0xff]  ;;  %v1774_v50 = vld [vmem:[#allocation8] sm:$0xff]  }
  0xad   : > { %v1775_v51 = vld [vmem:[#allocation8 + $0x48] sm:$0xff]   ;;  %1598 = vmatpush3.bf16.msra.mxu1 %v1774_v50  ;;  %v1778_v54 = vld [vmem:[#allocation8 + $0x10] sm:$0xff]   ;;  %v1779_v55 = vld [vmem:[#allocation8 + $0x58] sm:$0xff]  }
  0xae   : > { %663 = vperm.xlu1 %1748, %v537_v7   ;;  %903 = vmatpush1.bf16.msra.mxu0 %v1763_v26  ;;  %v1776_v52 = vld [vmem:[#allocation8 + $0x8] sm:$0xff]   ;;  %v1780_v56 = vld [vmem:[#allocation8 + $0x18] sm:$0xff]   ;;  %v1781_v57 = vld [vmem:[#allocation8 + $0x60] sm:$0xff]  }
  0xaf   : > { %658 = vperm.xlu0 %1747, %v536_v8   ;;  %904 = vmatprep.subr.bf16.mxu0 %v1764_v27  ;;  %v1782_v58 = vld [vmem:[#allocation8 + $0x20] sm:$0xff]   ;;  %v2301_v63 = vld [vmem:[%s2233_s29 + $0x8] sm:$0xff]  ;;  %v488_v15 = vld [vmem:[%s2226_s21 + $0x10] sm:$0xff] }
  0xb0   : > { %1599 = vmatprep.subr.bf16.mxu1 %v1775_v51  ;;  %v2297_v60 = vld [vmem:[%s2233_s29] sm:$0xff]  ;;  %v487_v1 = vld [vmem:[%s2226_s21 + $0x8] sm:$0xff] }
  0xb1   : > { %1600 = vmatpush3.bf16.msra.mxu1 %v1776_v52  ;;  %v486_v62 = vld [vmem:[%s2226_s21] sm:$0xff]  ;;  %v491_v27 = vld [vmem:[%s2226_s21 + $0x28] sm:$0xff] }
  0xb2   : > { %577 = vperm.xlu1 %1748, %v523_v12   ;;  %905 = vmatpush1.bf16.msra.mxu0 %v1766_v29  ;;  %v489_v12 = vld [vmem:[%s2226_s21 + $0x18] sm:$0xff]  ;;  %v2319_v29 = vld [vmem:[%s2233_s29 + $0x28] sm:$0xff] }
  0xb3   : > { %572 = vperm.xlu0 %1747, %v522_v14   ;;  %906 = vmatprep.subr.bf16.mxu0 %v1767_v31  ;;  %v2308_v14 = vld [vmem:[%s2233_s29 + $0x18] sm:$0xff]  ;;  %v2323_v31 = vld [vmem:[%s2233_s29 + $0x20] sm:$0xff] }
  0xb4   : > { %1601 = vmatprep.subr.bf16.mxu1 %v1777_v53 }
  0xb5   : > { %1602 = vmatpush3.bf16.msra.mxu1 %v1778_v54 }
  0xb6   : > { %673 = vperm.xlu1 %1748, %v539_v16   ;;  %907 = vmatpush1.bf16.msra.mxu0 %v1769_v33  ;;  %v2312_v16 = vld [vmem:[%s2233_s29 + $0x10] sm:$0xff] }
  0xb7   : > { %668 = vperm.xlu0 %1747, %v538_v17   ;;  %908 = vmatprep.subr.bf16.mxu0 %v1770_v35 }
  0xb8   : > { %1603 = vmatprep.subr.bf16.mxu1 %v1779_v55 }
  0xb9   : > { %1604 = vmatpush3.bf16.msra.mxu1 %v1780_v56 }
  0xba   : > { %587 = vperm.xlu1 %1748, %v525_v20   ;;  %909 = vmatpush1.bf16.msra.mxu0 %v1772_v37 }
  0xbb   : > { %582 = vperm.xlu0 %1747, %v524_v22   ;;  %1605 = vmatprep.subr.bf16.mxu1 %v1781_v57  ;;  %v495_v57 = vld [vmem:[%s2226_s21 + $0x48] sm:$0xff] }
  0xbd   : > { %1606 = vmatpush3.bf16.msra.mxu1 %v1782_v58 }
  0xbe   : > { %683 = vperm.xlu1 %1748, %v541_v24  }
  0xbf   : > { %678 = vperm.xlu0 %1747, %v540_v25  }
  0xc2   : > { %597 = vperm.xlu1 %1748, %v527_v28  }
  0xc3   : > { %592 = vperm.xlu0 %1747, %v526_v30   ;;  %v490_v30 = vld [vmem:[%s2226_s21 + $0x20] sm:$0xff] }
  0xc6   : > { %693 = vperm.xlu1 %1748, %v543_v32  }
  0xc7   : > { %688 = vperm.xlu0 %1747, %v542_v34  }
  0xca   : > { %607 = vperm.xlu1 %1748, %v529_v36  }
  0xcb   : > { %602 = vperm.xlu0 %1747, %v528_v38  }
  0xce   : > { %703 = vperm.xlu1 %1748, %v545_v39  }
  0xcf   : > { %698 = vperm.xlu0 %1747, %v544_v40  }
  0xd2   : > { %617 = vperm.xlu1 %1748, %v531_v41  }
  0xd3   : > { %612 = vperm.xlu0 %1747, %v530_v42   ;;  %v493_v42 = vld [vmem:[%s2226_s21 + $0x38] sm:$0xff] }
  0xd6   : > { %713 = vperm.xlu1 %1748, %v547_v43  }
  0xd7   : > { %708 = vperm.xlu0 %1747, %v546_v44   ;;  %v2330_v44 = vld [vmem:[%s2233_s29 + $0x38] sm:$0xff] }
  0xda   : > { %627 = vperm.xlu1 %1748, %v533_v45   ;;  %v492_v45 = vld [vmem:[%s2226_s21 + $0x30] sm:$0xff] }
  0xdb   : > { %622 = vperm.xlu0 %1747, %v532_v46   ;;  %v2334_v46 = vld [vmem:[%s2233_s29 + $0x30] sm:$0xff] }
  0xde   : > { %723 = vperm.xlu1 %1748, %v549_v47  }
  0xdf   : > { %718 = vperm.xlu0 %1747, %v548_v48  }
 0x121   : > { %v649_v59 = vpop.permute.xlu1 %648 }
 0x122   : > { %v553_v61 = vpop.permute.xlu0 %552  ;;  %v726_v2 = vmul.f32 %v649_v59, %v2297_v60  ;;  %v2341_v59 = vld [vmem:[%s2233_s29 + $0x48] sm:$0xff] }
 0x123   : > { %v630_v3 = vmul.f32 %v553_v61, %v486_v62  ;;  %v494_v61 = vld [vmem:[%s2226_s21 + $0x40] sm:$0xff] }
 0x124   : > { %v2345_v62 = vld [vmem:[%s2233_s29 + $0x40] sm:$0xff] }
 0x125   : > { %v654_v4 = vpop.permute.xlu1 %653  ;;  %v742_v8 = vadd.f32 %v726_v2, %v630_v3 }
 0x126   : > { %v727_v5 = vmul.f32 %v654_v4, %v2301_v63  ;;  %v558_v6 = vpop.permute.xlu0 %557 }
 0x127   : > { %v631_v7 = vmul.f32 %v558_v6, %v487_v1 }
 0x129   : > { %v743_v9 = vadd.f32 %v727_v5, %v631_v7  ;;  %v568_v10 = vpop.permute.xlu1 %567 }
 0x12a   : > { %v563_v11 = vpop.permute.xlu0 %562  ;;  %v633_v18 = vmul.f32 %v568_v10, %v489_v12 }
 0x12b   : > { %v758_v13 = vpack.c.bf16 %v743_v9, %v742_v8  ;;  %v632_v21 = vmul.f32 %v563_v11, %v488_v15  ;;  %v497_v11 = vld [vmem:[%s2226_s21 + $0x58] sm:$0xff]  ;;  %v496_v15 = vld [vmem:[%s2226_s21 + $0x50] sm:$0xff] }
 0x12d   : > { %927 = vmatmul.mubr.bf16.vlgmr.msra.gmra.mrb[0].mxu0 %v758_v13  ;;  %v664_v17 = vpop.permute.xlu1 %663  ;;  %v2352_v13 = vld [vmem:[%s2233_s29 + $0x58] sm:$0xff] }
 0x12e   : > { %v729_v19 = vmul.f32 %v664_v17, %v2308_v14  ;;  %v659_v20 = vpop.permute.xlu0 %658  ;;  %936 = vmatprep.mubr.bf16.mxu0 %v1977_v0  ;;  %v2356_v17 = vld [vmem:[%s2233_s29 + $0x50] sm:$0xff] }
 0x12f   : > { %v728_v22 = vmul.f32 %v659_v20, %v2312_v16 }
 0x130   : > { %v745_v23 = vadd.f32 %v729_v19, %v633_v18 }
 0x131   : > { %v744_v24 = vadd.f32 %v728_v22, %v632_v21  ;;  %v578_v25 = vpop.permute.xlu1 %577 }
 0x132   : > { %v573_v26 = vpop.permute.xlu0 %572  ;;  %v635_v33 = vmul.f32 %v578_v25, %v491_v27 }
 0x133   : > { %v759_v28 = vpack.c.bf16 %v745_v23, %v744_v24  ;;  %v634_v36 = vmul.f32 %v573_v26, %v490_v30 }
 0x135   : > { %937 = vmatmul.mubr.bf16.gmra.mrb[4].mxu0 %v759_v28  ;;  %v674_v32 = vpop.permute.xlu1 %673  ;;  %v499_v28 = vld [vmem:[%s2226_s21 + $0x68] sm:$0xff] }
 0x136   : > { %v731_v34 = vmul.f32 %v674_v32, %v2319_v29  ;;  %v669_v35 = vpop.permute.xlu0 %668  ;;  %946 = vmatprep.mubr.bf16.mxu0 %v1977_v0  ;;  %v2363_v32 = vld [vmem:[%s2233_s29 + $0x68] sm:$0xff] }
 0x137   : > { %v730_v37 = vmul.f32 %v669_v35, %v2323_v31 }
 0x138   : > { %v747_v38 = vadd.f32 %v731_v34, %v635_v33  ;;  %v498_v33 = vld [vmem:[%s2226_s21 + $0x60] sm:$0xff] }
 0x139   : > { %v746_v39 = vadd.f32 %v730_v37, %v634_v36  ;;  %v588_v40 = vpop.permute.xlu1 %587  ;;  %v2367_v34 = vld [vmem:[%s2233_s29 + $0x60] sm:$0xff] }
 0x13a   : > { %v583_v41 = vpop.permute.xlu0 %582  ;;  %v637_v48 = vmul.f32 %v588_v40, %v493_v42 }
 0x13b   : > { %v760_v43 = vpack.c.bf16 %v747_v38, %v746_v39  ;;  %v636_v51 = vmul.f32 %v583_v41, %v492_v45 }
 0x13d   : > { %947 = vmatmul.mubr.bf16.gmra.mrb[8].mxu0 %v760_v43  ;;  %v684_v47 = vpop.permute.xlu1 %683 }
 0x13e   : > { %v733_v49 = vmul.f32 %v684_v47, %v2330_v44  ;;  %v679_v50 = vpop.permute.xlu0 %678  ;;  %956 = vmatprep.mubr.bf16.mxu0 %v1977_v0  ;;  %v501_v47 = vld [vmem:[%s2226_s21 + $0x78] sm:$0xff] }
 0x13f   : > { %v732_v52 = vmul.f32 %v679_v50, %v2334_v46  ;;  %v500_v50 = vld [vmem:[%s2226_s21 + $0x70] sm:$0xff]  ;;  %s1347_s21 = sld [smem:[#allocation10]] }
 0x140   : > { %v749_v53 = vadd.f32 %v733_v49, %v637_v48  ;;  %v2374_v49 = vld [vmem:[%s2233_s29 + $0x78] sm:$0xff] }
 0x141   : > { %v748_v54 = vadd.f32 %v732_v52, %v636_v51  ;;  %v598_v55 = vpop.permute.xlu1 %597  ;;  %v2378_v51 = vld [vmem:[%s2233_s29 + $0x70] sm:$0xff] }
 0x142   : > { %v593_v56 = vpop.permute.xlu0 %592  ;;  %v639_v2 = vmul.f32 %v598_v55, %v495_v57 }
 0x143   : > { %v761_v58 = vpack.c.bf16 %v749_v53, %v748_v54  ;;  %v638_v5 = vmul.f32 %v593_v56, %v494_v61 }
 0x145   : > { %957 = vmatmul.mubr.bf16.gmra.mrb[12].mxu0 %v761_v58  ;;  %v694_v1 = vpop.permute.xlu1 %693 }
 0x146   : > { %v735_v3 = vmul.f32 %v694_v1, %v2341_v59  ;;  %v689_v4 = vpop.permute.xlu0 %688  ;;  %966 = vmatprep.mubr.bf16.mxu0 %v1977_v0 }
 0x147   : > { %v734_v6 = vmul.f32 %v689_v4, %v2345_v62  ;;  %v1785_v4 = vld [vmem:[#allocation8 + $0x70] sm:$0xff]  }
 0x148   : > { %v751_v7 = vadd.f32 %v735_v3, %v639_v2  ;;  %v1783_v2 = vld [vmem:[#allocation8 + $0x68] sm:$0xff]  }
 0x149   : > { %v750_v8 = vadd.f32 %v734_v6, %v638_v5  ;;  %v608_v9 = vpop.permute.xlu1 %607  ;;  %v1784_v3 = vld [vmem:[#allocation8 + $0x28] sm:$0xff]   ;;  %1607 = vmatprep.subr.bf16.mxu1 %v1783_v2  ;;  %v1786_v5 = vld [vmem:[#allocation8 + $0x30] sm:$0xff]   ;;  %v1787_v6 = vld [vmem:[#allocation8 + $0x78] sm:$0xff]  }
 0x14a   : > { %v603_v10 = vpop.permute.xlu0 %602  ;;  %v641_v19 = vmul.f32 %v608_v9, %v497_v11  ;;  %1608 = vmatpush3.bf16.msra.mxu1 %v1784_v3 }
 0x14b   : > { %v762_v12 = vpack.c.bf16 %v751_v7, %v750_v8  ;;  %v640_v22 = vmul.f32 %v603_v10, %v496_v15  ;;  %1609 = vmatprep.subr.bf16.mxu1 %v1785_v4  ;;  %v1788_v7 = vld [vmem:[#allocation8 + $0x38] sm:$0xff]   ;;  %v1007_v10 = vld [vmem:[%s2541_s6] sm:$0x3] }
 0x14d   : > { %967 = vmatmul.mubr.bf16.gmra.mrb[16].mxu0 %v762_v12  ;;  %v704_v18 = vpop.permute.xlu1 %703  ;;  %v782_v12 = vld [vmem:[%s2387_s17] sm:$0xff] }
 0x14e   : > { %v737_v20 = vmul.f32 %v704_v18, %v2352_v13  ;;  %v699_v21 = vpop.permute.xlu0 %698  ;;  %976 = vmatprep.mubr.bf16.mxu0 %v1977_v0  ;;  %1610 = vmatpush3.bf16.msra.mxu1 %v1786_v5  ;;  %v783_v18 = vld [vmem:[%s2387_s17 + $0x8] sm:$0xff]  ;;  %v790_v5 = vld [vmem:[%s2387_s17 + $0x40] sm:$0xff] }
 0x14f   : > { %v736_v23 = vmul.f32 %v699_v21, %v2356_v17  ;;  %1611 = vmatprep.subr.bf16.mxu1 %v1787_v6 }
 0x150   : > { %v753_v24 = vadd.f32 %v737_v20, %v641_v19  ;;  %v784_v20 = vld [vmem:[%s2387_s17 + $0x10] sm:$0xff] }
 0x151   : > { %v752_v25 = vadd.f32 %v736_v23, %v640_v22  ;;  %v618_v26 = vpop.permute.xlu1 %617 }
 0x152   : > { %v613_v27 = vpop.permute.xlu0 %612  ;;  %v643_v36 = vmul.f32 %v618_v26, %v499_v28  ;;  %1612 = vmatpush3.bf16.msra.mxu1 %v1788_v7 }
 0x153   : > { %v763_v30 = vpack.c.bf16 %v753_v24, %v752_v25  ;;  %v642_v39 = vmul.f32 %v613_v27, %v498_v33  ;;  %v785_v24 = vld [vmem:[%s2387_s17 + $0x18] sm:$0xff] }
 0x155   : > { %977 = vmatmul.mubr.bf16.gmra.mrb[20].mxu0 %v763_v30  ;;  %v714_v35 = vpop.permute.xlu1 %713 }
 0x156   : > { %v739_v37 = vmul.f32 %v714_v35, %v2363_v32  ;;  %v709_v38 = vpop.permute.xlu0 %708  ;;  %986 = vmatprep.mubr.bf16.mxu0 %v1977_v0 }
 0x157   : > { %v738_v40 = vmul.f32 %v709_v38, %v2367_v34 }
 0x158   : > { %v755_v41 = vadd.f32 %v739_v37, %v643_v36  ;;  %v786_v37 = vld [vmem:[%s2387_s17 + $0x20] sm:$0xff] }
 0x159   : > { %v754_v42 = vadd.f32 %v738_v40, %v642_v39  ;;  %v628_v43 = vpop.permute.xlu1 %627 }
 0x15a   : > { %v623_v45 = vpop.permute.xlu0 %622  ;;  %v645_v53 = vmul.f32 %v628_v43, %v501_v47  ;;  %v788_v43 = vld [vmem:[%s2387_s17 + $0x30] sm:$0xff] }
 0x15b   : > { %v764_v48 = vpack.c.bf16 %v755_v41, %v754_v42  ;;  %v644_v56 = vmul.f32 %v623_v45, %v500_v50  ;;  %v787_v41 = vld [vmem:[%s2387_s17 + $0x28] sm:$0xff] }
 0x15d   : > { %987 = vmatmul.mubr.bf16.gmra.mrb[24].mxu0 %v764_v48  ;;  %v724_v52 = vpop.permute.xlu1 %723 }
 0x15e   : > { %v741_v54 = vmul.f32 %v724_v52, %v2374_v49  ;;  %v719_v55 = vpop.permute.xlu0 %718  ;;  %996 = vmatprep.mubr.bf16.mxu0 %v1977_v0  ;;  %v1009_v0 = vlaneseq  ;;  %v789_v52 = vld [vmem:[%s2387_s17 + $0x38] sm:$0xff] }
 0x15f   : > { %v740_v57 = vmul.f32 %v719_v55, %v2378_v51 }
 0x160   : > { %v757_v58 = vadd.f32 %v741_v54, %v645_v53  ;;  %v1010_v8 = vshrl.u32 %v1009_v0, 7  ;;  %v791_v0 = vld [vmem:[%s2387_s17 + $0x48] sm:$0xff] }
 0x161   : > { %v756_v61 = vadd.f32 %v740_v57, %v644_v56 }
 0x162   : > { %v1011_v9 = vsub.s32 0, %v1010_v8  ;;  %v1015_v11 = vsub.s32 1, %v1010_v8 }
 0x163   : > { %v765_v1 = vpack.c.bf16 %v757_v58, %v756_v61 }
 0x164   : > { %v2393_v15 = vrot.slane %v1007_v10, %v1011_v9  ;;  %v2397_v21 = vrot.slane %v1007_v10, %v1015_v11  ;;  %v792_v11 = vld [vmem:[%s2387_s17 + $0x50] sm:$0xff] }
 0x165   : > { %997 = vmatmul.mubr.bf16.gmra.mrb[28].mxu0 %v765_v1 }
 0x200   : > { %v928_v19 = vpop.f32.mrb[0].mxu0 }
 0x201   : > { %v929_v22 = vadd.f32 %v928_v19, %v782_v12  ;;  %v930_v23 = vpop.f32.mrb[1].mxu0  ;;  %v793_v19 = vld [vmem:[%s2387_s17 + $0x58] sm:$0xff] }
 0x202   : > { %v931_v25 = vadd.f32 %v930_v23, %v783_v18  ;;  %v932_v26 = vpop.f32.mrb[2].mxu0 }
 0x203   : > { %v1019_v27 = vadd.f32 %v2393_v15, %v929_v22  ;;  %v933_v28 = vadd.f32 %v932_v26, %v784_v20  ;;  %v934_v30 = vpop.f32.mrb[3].mxu0 }
 0x204   : > { %v935_v33 = vadd.f32 %v934_v30, %v785_v24  ;;  %v1020_v35 = vadd.f32 %v2397_v21, %v931_v25 }
 0x205   : > { %v1021_v36 = vadd.f32 %v2393_v15, %v933_v28  ;;  %v1051_v39 = vmax.f32 %v1019_v27, 0.0 }
 0x206   : > { %v1022_v38 = vadd.f32 %v2397_v21, %v935_v33  ;;  %v1052_v45 = vmax.f32 %v1020_v35, 0.0 }
 0x207   : > { %v1053_v40 = vmax.f32 %v1021_v36, 0.0  ;;  %v794_v36 = vld [vmem:[%s2387_s17 + $0x60] sm:$0xff] }
 0x208   : > { %v938_v42 = vpop.f32.mrb[4].mxu0  ;;  %v1054_v47 = vmax.f32 %v1022_v38, 0.0 }
 0x209   : > { %v939_v48 = vadd.f32 %v938_v42, %v786_v37  ;;  %v940_v50 = vpop.f32.mrb[5].mxu0  ;;  %v1083_v53 = vpack.c.bf16 %v1053_v40, %v1051_v39  ;;  %v795_v39 = vld [vmem:[%s2387_s17 + $0x68] sm:$0xff] }
 0x20a   : > { %v941_v54 = vadd.f32 %v940_v50, %v787_v41  ;;  %v942_v55 = vpop.f32.mrb[6].mxu0  ;;  %v1084_v56 = vpack.c.bf16 %v1054_v47, %v1052_v45 }
 0x20b   : > { %v1023_v57 = vadd.f32 %v2393_v15, %v939_v48  ;;  %v943_v58 = vadd.f32 %v942_v55, %v788_v43  ;;  %v944_v61 = vpop.f32.mrb[7].mxu0  ;;  %v796_v43 = vld [vmem:[%s2387_s17 + $0x70] sm:$0xff]  ;;  %v797_v48 = vld [vmem:[%s2387_s17 + $0x78] sm:$0xff] }
 0x20c   : > { %v1024_v1 = vadd.f32 %v2397_v21, %v941_v54  ;;  %v945_v2 = vadd.f32 %v944_v61, %v789_v52  ;;  %1266 = vmatprep.mubr.bf16.mxu1 %v1084_v56 }
 0x20d   : > { %v1025_v3 = vadd.f32 %v2393_v15, %v943_v58  ;;  %1267 = vmatmul.mubr.bf16.vlgmr.msra.gmra.mrb[0].mxu1 %v1083_v53  ;;  %v1055_v6 = vmax.f32 %v1023_v57, 0.0 }
 0x20e   : > { %v1026_v4 = vadd.f32 %v2397_v21, %v945_v2  ;;  %v1056_v8 = vmax.f32 %v1024_v1, 0.0 }
 0x20f   : > { %v1057_v7 = vmax.f32 %v1025_v3, 0.0  ;;  %v798_v3 = vld [vmem:[%s2387_s17 + $0x80] sm:$0xff] }
 0x210   : > { %v1058_v9 = vmax.f32 %v1026_v4, 0.0  ;;  %v948_v10 = vpop.f32.mrb[8].mxu0 }
 0x211   : > { %v949_v12 = vadd.f32 %v948_v10, %v790_v5  ;;  %v950_v18 = vpop.f32.mrb[9].mxu0  ;;  %v1085_v20 = vpack.c.bf16 %v1057_v7, %v1055_v6  ;;  %v799_v6 = vld [vmem:[%s2387_s17 + $0x88] sm:$0xff] }
 0x212   : > { %v951_v22 = vadd.f32 %v950_v18, %v791_v0  ;;  %v952_v23 = vpop.f32.mrb[10].mxu0  ;;  %v1086_v24 = vpack.c.bf16 %v1058_v9, %v1056_v8  ;;  %v800_v9 = vld [vmem:[%s2387_s17 + $0x90] sm:$0xff] }
 0x213   : > { %v1027_v25 = vadd.f32 %v2393_v15, %v949_v12  ;;  %v953_v26 = vadd.f32 %v952_v23, %v792_v11  ;;  %v954_v27 = vpop.f32.mrb[11].mxu0  ;;  %v801_v12 = vld [vmem:[%s2387_s17 + $0x98] sm:$0xff] }
 0x214   : > { %v1028_v28 = vadd.f32 %v2397_v21, %v951_v22  ;;  %v955_v30 = vadd.f32 %v954_v27, %v793_v19  ;;  %1274 = vmatprep.mubr.bf16.mxu1 %v1086_v24 }
 0x215   : > { %v1029_v33 = vadd.f32 %v2393_v15, %v953_v26  ;;  %1275 = vmatmul.mubr.bf16.gmra.mrb[4].mxu1 %v1085_v20  ;;  %v1059_v37 = vmax.f32 %v1027_v25, 0.0 }
 0x216   : > { %v1030_v35 = vadd.f32 %v2397_v21, %v955_v30  ;;  %v1060_v40 = vmax.f32 %v1028_v28, 0.0 }
 0x217   : > { %v1061_v38 = vmax.f32 %v1029_v33, 0.0  ;;  %v802_v33 = vld [vmem:[%s2387_s17 + $0xa0] sm:$0xff] }
 0x218   : > { %v1062_v41 = vmax.f32 %v1030_v35, 0.0  ;;  %v958_v42 = vpop.f32.mrb[12].mxu0 }
 0x219   : > { %v959_v45 = vadd.f32 %v958_v42, %v794_v36  ;;  %v960_v47 = vpop.f32.mrb[13].mxu0  ;;  %v1087_v50 = vpack.c.bf16 %v1061_v38, %v1059_v37  ;;  %v803_v37 = vld [vmem:[%s2387_s17 + $0xa8] sm:$0xff] }
 0x21a   : > { %v961_v52 = vadd.f32 %v960_v47, %v795_v39  ;;  %v962_v53 = vpop.f32.mrb[14].mxu0  ;;  %v1088_v54 = vpack.c.bf16 %v1062_v41, %v1060_v40  ;;  %v804_v41 = vld [vmem:[%s2387_s17 + $0xb0] sm:$0xff] }
 0x21b   : > { %v1031_v55 = vadd.f32 %v2393_v15, %v959_v45  ;;  %v963_v56 = vadd.f32 %v962_v53, %v796_v43  ;;  %v964_v57 = vpop.f32.mrb[15].mxu0  ;;  %v805_v45 = vld [vmem:[%s2387_s17 + $0xb8] sm:$0xff] }
 0x21c   : > { %v1032_v58 = vadd.f32 %v2397_v21, %v961_v52  ;;  %v965_v61 = vadd.f32 %v964_v57, %v797_v48  ;;  %1282 = vmatprep.mubr.bf16.mxu1 %v1088_v54 }
 0x21d   : > { %v1033_v1 = vadd.f32 %v2393_v15, %v963_v56  ;;  %1283 = vmatmul.mubr.bf16.gmra.mrb[8].mxu1 %v1087_v50  ;;  %v1063_v4 = vmax.f32 %v1031_v55, 0.0 }
 0x21e   : > { %v1034_v2 = vadd.f32 %v2397_v21, %v965_v61  ;;  %v1064_v7 = vmax.f32 %v1032_v58, 0.0 }
 0x21f   : > { %v1065_v5 = vmax.f32 %v1033_v1, 0.0  ;;  %v806_v1 = vld [vmem:[%s2387_s17 + $0xc0] sm:$0xff] }
 0x220   : > { %v1066_v0 = vmax.f32 %v1034_v2, 0.0  ;;  %v968_v8 = vpop.f32.mrb[16].mxu0 }
 0x221   : > { %v969_v10 = vadd.f32 %v968_v8, %v798_v3  ;;  %v970_v11 = vpop.f32.mrb[17].mxu0  ;;  %v1089_v18 = vpack.c.bf16 %v1065_v5, %v1063_v4  ;;  %v807_v4 = vld [vmem:[%s2387_s17 + $0xc8] sm:$0xff] }
 0x222   : > { %v971_v19 = vadd.f32 %v970_v11, %v799_v6  ;;  %v972_v20 = vpop.f32.mrb[18].mxu0  ;;  %v1090_v22 = vpack.c.bf16 %v1066_v0, %v1064_v7  ;;  %v808_v0 = vld [vmem:[%s2387_s17 + $0xd0] sm:$0xff] }
 0x223   : > { %v1035_v23 = vadd.f32 %v2393_v15, %v969_v10  ;;  %v973_v24 = vadd.f32 %v972_v20, %v800_v9  ;;  %v974_v25 = vpop.f32.mrb[19].mxu0  ;;  %v809_v10 = vld [vmem:[%s2387_s17 + $0xd8] sm:$0xff] }
 0x224   : > { %v1036_v26 = vadd.f32 %v2397_v21, %v971_v19  ;;  %v975_v27 = vadd.f32 %v974_v25, %v801_v12  ;;  %1290 = vmatprep.mubr.bf16.mxu1 %v1090_v22 }
 0x225   : > { %v1037_v28 = vadd.f32 %v2393_v15, %v973_v24  ;;  %1291 = vmatmul.mubr.bf16.gmra.mrb[12].mxu1 %v1089_v18  ;;  %v1067_v35 = vmax.f32 %v1035_v23, 0.0 }
 0x226   : > { %v1038_v30 = vadd.f32 %v2397_v21, %v975_v27  ;;  %v1068_v38 = vmax.f32 %v1036_v26, 0.0 }
 0x227   : > { %v1069_v36 = vmax.f32 %v1037_v28, 0.0  ;;  %v810_v28 = vld [vmem:[%s2387_s17 + $0xe0] sm:$0xff] }
 0x228   : > { %v1070_v39 = vmax.f32 %v1038_v30, 0.0  ;;  %v978_v40 = vpop.f32.mrb[20].mxu0 }
 0x229   : > { %v979_v42 = vadd.f32 %v978_v40, %v802_v33  ;;  %v980_v43 = vpop.f32.mrb[21].mxu0  ;;  %v1091_v47 = vpack.c.bf16 %v1069_v36, %v1067_v35  ;;  %v811_v35 = vld [vmem:[%s2387_s17 + $0xe8] sm:$0xff] }
 0x22a   : > { %v981_v48 = vadd.f32 %v980_v43, %v803_v37  ;;  %v982_v50 = vpop.f32.mrb[22].mxu0  ;;  %v1092_v52 = vpack.c.bf16 %v1070_v39, %v1068_v38  ;;  %v812_v39 = vld [vmem:[%s2387_s17 + $0xf0] sm:$0xff] }
 0x22b   : > { %v1039_v53 = vadd.f32 %v2393_v15, %v979_v42  ;;  %v983_v54 = vadd.f32 %v982_v50, %v804_v41  ;;  %v984_v55 = vpop.f32.mrb[23].mxu0  ;;  %v813_v42 = vld [vmem:[%s2387_s17 + $0xf8] sm:$0xff] }
 0x22c   : > { %v1040_v56 = vadd.f32 %v2397_v21, %v981_v48  ;;  %v985_v57 = vadd.f32 %v984_v55, %v805_v45  ;;  %1298 = vmatprep.mubr.bf16.mxu1 %v1092_v52 }
 0x22d   : > { %v1041_v58 = vadd.f32 %v2393_v15, %v983_v54  ;;  %1299 = vmatmul.mubr.bf16.gmra.mrb[16].mxu1 %v1091_v47  ;;  %v1071_v2 = vmax.f32 %v1039_v53, 0.0 }
 0x22e   : > { %v1042_v61 = vadd.f32 %v2397_v21, %v985_v57  ;;  %v1072_v5 = vmax.f32 %v1040_v56, 0.0 }
 0x22f   : > { %v1073_v3 = vmax.f32 %v1041_v58, 0.0 }
 0x230   : > { %v1074_v6 = vmax.f32 %v1042_v61, 0.0  ;;  %v988_v7 = vpop.f32.mrb[24].mxu0 }
 0x231   : > { %v989_v8 = vadd.f32 %v988_v7, %v806_v1  ;;  %v990_v9 = vpop.f32.mrb[25].mxu0  ;;  %v1093_v11 = vpack.c.bf16 %v1073_v3, %v1071_v2 }
 0x232   : > { %v991_v12 = vadd.f32 %v990_v9, %v807_v4  ;;  %v992_v18 = vpop.f32.mrb[26].mxu0  ;;  %v1094_v19 = vpack.c.bf16 %v1074_v6, %v1072_v5  ;;  %v2463_v6 = vld [vmem:[%s2543_s8] ss:$0 sm:$0xff] }
 0x233   : > { %v1043_v20 = vadd.f32 %v2393_v15, %v989_v8  ;;  %v993_v22 = vadd.f32 %v992_v18, %v808_v0  ;;  %v994_v23 = vpop.f32.mrb[27].mxu0 }
 0x234   : > { %v1044_v24 = vadd.f32 %v2397_v21, %v991_v12  ;;  %v995_v25 = vadd.f32 %v994_v23, %v809_v10  ;;  %1306 = vmatprep.mubr.bf16.mxu1 %v1094_v19 }
 0x235   : > { %v1045_v26 = vadd.f32 %v2393_v15, %v993_v22  ;;  %1307 = vmatmul.mubr.bf16.gmra.mrb[20].mxu1 %v1093_v11  ;;  %v1075_v30 = vmax.f32 %v1043_v20, 0.0 }
 0x236   : > { %v1046_v27 = vadd.f32 %v2397_v21, %v995_v25  ;;  %v1076_v36 = vmax.f32 %v1044_v24, 0.0 }
 0x237   : > { %v1077_v33 = vmax.f32 %v1045_v26, 0.0 }
 0x238   : > { %v1078_v37 = vmax.f32 %v1046_v27, 0.0  ;;  %v998_v38 = vpop.f32.mrb[28].mxu0 }
 0x239   : > { %v999_v40 = vadd.f32 %v998_v38, %v810_v28  ;;  %v1000_v41 = vpop.f32.mrb[29].mxu0  ;;  %v1095_v43 = vpack.c.bf16 %v1077_v33, %v1075_v30 }
 0x23a   : > { %v1001_v45 = vadd.f32 %v1000_v41, %v811_v35  ;;  %v1002_v47 = vpop.f32.mrb[30].mxu0  ;;  %v1096_v48 = vpack.c.bf16 %v1078_v37, %v1076_v36 }
 0x23b   : > { %v1047_v50 = vadd.f32 %v2393_v15, %v999_v40  ;;  %v1003_v52 = vadd.f32 %v1002_v47, %v812_v39  ;;  %v1004_v53 = vpop.f32.mrb[31].mxu0 }
 0x23c   : > { %v1048_v54 = vadd.f32 %v2397_v21, %v1001_v45  ;;  %v1005_v55 = vadd.f32 %v1004_v53, %v813_v42  ;;  %1314 = vmatprep.mubr.bf16.mxu1 %v1096_v48 }
 0x23d   : > { %v1049_v56 = vadd.f32 %v2393_v15, %v1003_v52  ;;  %1315 = vmatmul.mubr.bf16.gmra.mrb[24].mxu1 %v1095_v43  ;;  %v1079_v58 = vmax.f32 %v1047_v50, 0.0 }
 0x23e   : > { %v1050_v57 = vadd.f32 %v2397_v21, %v1005_v55  ;;  %v1080_v1 = vmax.f32 %v1048_v54, 0.0 }
 0x23f   : > { %v1081_v61 = vmax.f32 %v1049_v56, 0.0 }
 0x240   : > { %v1082_v2 = vmax.f32 %v1050_v57, 0.0 }
 0x241   : > { %v1097_v3 = vpack.c.bf16 %v1081_v61, %v1079_v58 }
 0x242   : > { %v1098_v4 = vpack.c.bf16 %v1082_v2, %v1080_v1 }
 0x244   : > { %1322 = vmatprep.mubr.bf16.mxu1 %v1098_v4 }
 0x245   : > { %1323 = vmatmul.mubr.bf16.gmra.mrb[28].mxu1 %v1097_v3 }
 0x2e0   : > { %v1613_v5 = vpop.f32.mrb[0].mxu1 }
 0x2e1   : > { %v1614_v7 = vpop.f32.mrb[1].mxu1 }
 0x2e2   : > { %v1615_v0 = vadd.f32 %v1614_v7, %v1613_v5  ;;  %v1616_v15 = vpop.f32.mrb[2].mxu1 }
 0x2e3   : > { %v1617_v8 = vpop.f32.mrb[3].mxu1 }
 0x2e4   : > { %v1269_v21 = vadd.f32 %v1615_v0, %v2463_v6  ;;  %v1618_v9 = vadd.f32 %v1617_v8, %v1616_v15 }
 0x2e6   : > { %v1331_v10 = vsub.f32 %v2297_v60, %v1269_v21  ;;  %v1272_v11 = vadd.f32 %v1618_v9, %v2463_v6 }
 0x2e8   : > { %v1332_v12 = vsub.f32 %v2301_v63, %v1272_v11  ;;  %v1619_v18 = vpop.f32.mrb[4].mxu1  ;;  %v1348_v20 = vmul.f32 %v1331_v10, %v1331_v10 }
 0x2e9   : > { %v1620_v19 = vpop.f32.mrb[5].mxu1 }
 0x2ea   : > { %v1349_v22 = vmul.f32 %v1332_v12, %v1332_v12  ;;  %v1621_v23 = vadd.f32 %v1620_v19, %v1619_v18  ;;  %v1622_v24 = vpop.f32.mrb[6].mxu1 }
 0x2eb   : > { %v1623_v25 = vpop.f32.mrb[7].mxu1 }
 0x2ec   : > { %v1364_v26 = vadd.f32 %v1349_v22, %v1348_v20  ;;  %v1277_v27 = vadd.f32 %v1621_v23, %v2463_v6  ;;  %v1624_v28 = vadd.f32 %v1623_v25, %v1622_v24 }
 0x2ee   : > { %v1333_v30 = vsub.f32 %v2312_v16, %v1277_v27  ;;  %v1280_v33 = vadd.f32 %v1624_v28, %v2463_v6 }
 0x2f0   : > { %v1350_v60 = vmul.f32 %v1333_v30, %v1333_v30  ;;  %v1334_v35 = vsub.f32 %v2308_v14, %v1280_v33  ;;  %v1625_v36 = vpop.f32.mrb[8].mxu1 }
 0x2f1   : > { %v1626_v63 = vpop.f32.mrb[9].mxu1 }
 0x2f2   : > { %v1365_v37 = vadd.f32 %v1364_v26, %v1350_v60  ;;  %v1351_v38 = vmul.f32 %v1334_v35, %v1334_v35  ;;  %v1627_v39 = vadd.f32 %v1626_v63, %v1625_v36  ;;  %v1628_v40 = vpop.f32.mrb[10].mxu1 }
 0x2f3   : > { %v1629_v41 = vpop.f32.mrb[11].mxu1 }
 0x2f4   : > { %v1366_v42 = vadd.f32 %v1365_v37, %v1351_v38  ;;  %v1285_v43 = vadd.f32 %v1627_v39, %v2463_v6  ;;  %v1630_v45 = vadd.f32 %v1629_v41, %v1628_v40 }
 0x2f6   : > { %v1335_v47 = vsub.f32 %v2323_v31, %v1285_v43  ;;  %v1288_v16 = vadd.f32 %v1630_v45, %v2463_v6 }
 0x2f8   : > { %v1352_v48 = vmul.f32 %v1335_v47, %v1335_v47  ;;  %v1336_v50 = vsub.f32 %v2319_v29, %v1288_v16  ;;  %v1631_v52 = vpop.f32.mrb[12].mxu1 }
 0x2f9   : > { %v1632_v14 = vpop.f32.mrb[13].mxu1 }
 0x2fa   : > { %v1367_v53 = vadd.f32 %v1366_v42, %v1352_v48  ;;  %v1353_v54 = vmul.f32 %v1336_v50, %v1336_v50  ;;  %v1633_v55 = vadd.f32 %v1632_v14, %v1631_v52  ;;  %v1634_v56 = vpop.f32.mrb[14].mxu1 }
 0x2fb   : > { %v1635_v57 = vpop.f32.mrb[15].mxu1 }
 0x2fc   : > { %v1368_v58 = vadd.f32 %v1367_v53, %v1353_v54  ;;  %v1293_v61 = vadd.f32 %v1633_v55, %v2463_v6  ;;  %v1636_v1 = vadd.f32 %v1635_v57, %v1634_v56 }
 0x2fe   : > { %v1337_v2 = vsub.f32 %v2334_v46, %v1293_v61  ;;  %v1296_v31 = vadd.f32 %v1636_v1, %v2463_v6 }
 0x300   : > { %v1354_v3 = vmul.f32 %v1337_v2, %v1337_v2  ;;  %v1338_v4 = vsub.f32 %v2330_v44, %v1296_v31  ;;  %v1637_v5 = vpop.f32.mrb[16].mxu1 }
 0x301   : > { %v1638_v29 = vpop.f32.mrb[17].mxu1 }
 0x302   : > { %v1369_v7 = vadd.f32 %v1368_v58, %v1354_v3  ;;  %v1355_v0 = vmul.f32 %v1338_v4, %v1338_v4  ;;  %v1639_v15 = vadd.f32 %v1638_v29, %v1637_v5  ;;  %v1640_v8 = vpop.f32.mrb[18].mxu1 }
 0x303   : > { %v1641_v21 = vpop.f32.mrb[19].mxu1 }
 0x304   : > { %v1370_v9 = vadd.f32 %v1369_v7, %v1355_v0  ;;  %v1301_v10 = vadd.f32 %v1639_v15, %v2463_v6  ;;  %v1642_v11 = vadd.f32 %v1641_v21, %v1640_v8 }
 0x306   : > { %v1339_v12 = vsub.f32 %v2345_v62, %v1301_v10  ;;  %v1304_v46 = vadd.f32 %v1642_v11, %v2463_v6 }
 0x308   : > { %v1356_v18 = vmul.f32 %v1339_v12, %v1339_v12  ;;  %v1340_v19 = vsub.f32 %v2341_v59, %v1304_v46  ;;  %v1643_v20 = vpop.f32.mrb[20].mxu1 }
 0x309   : > { %v1644_v44 = vpop.f32.mrb[21].mxu1 }
 0x30a   : > { %v1371_v22 = vadd.f32 %v1370_v9, %v1356_v18  ;;  %v1357_v23 = vmul.f32 %v1340_v19, %v1340_v19  ;;  %v1645_v24 = vadd.f32 %v1644_v44, %v1643_v20  ;;  %v1646_v25 = vpop.f32.mrb[22].mxu1 }
 0x30b   : > { %v1647_v26 = vpop.f32.mrb[23].mxu1 }
 0x30c   : > { %v1372_v27 = vadd.f32 %v1371_v22, %v1357_v23  ;;  %v1309_v28 = vadd.f32 %v1645_v24, %v2463_v6  ;;  %v1648_v30 = vadd.f32 %v1647_v26, %v1646_v25 }
 0x30e   : > { %v1341_v33 = vsub.f32 %v2356_v17, %v1309_v28  ;;  %v1312_v62 = vadd.f32 %v1648_v30, %v2463_v6 }
 0x310   : > { %v1358_v60 = vmul.f32 %v1341_v33, %v1341_v33  ;;  %v1342_v35 = vsub.f32 %v2352_v13, %v1312_v62  ;;  %v1649_v36 = vpop.f32.mrb[24].mxu1 }
 0x311   : > { %v1650_v59 = vpop.f32.mrb[25].mxu1 }
 0x312   : > { %v1373_v63 = vadd.f32 %v1372_v27, %v1358_v60  ;;  %v1359_v37 = vmul.f32 %v1342_v35, %v1342_v35  ;;  %v1651_v38 = vadd.f32 %v1650_v59, %v1649_v36  ;;  %v1652_v39 = vpop.f32.mrb[26].mxu1 }
 0x313   : > { %v1653_v40 = vpop.f32.mrb[27].mxu1 }
 0x314   : > { %v1374_v41 = vadd.f32 %v1373_v63, %v1359_v37  ;;  %v1317_v42 = vadd.f32 %v1651_v38, %v2463_v6  ;;  %v1654_v43 = vadd.f32 %v1653_v40, %v1652_v39 }
 0x316   : > { %v1343_v45 = vsub.f32 %v2367_v34, %v1317_v42  ;;  %v1320_v17 = vadd.f32 %v1654_v43, %v2463_v6 }
 0x318   : > { %v1360_v47 = vmul.f32 %v1343_v45, %v1343_v45  ;;  %v1344_v16 = vsub.f32 %v2363_v32, %v1320_v17  ;;  %v1655_v48 = vpop.f32.mrb[28].mxu1 }
 0x319   : > { %v1656_v13 = vpop.f32.mrb[29].mxu1 }
 0x31a   : > { %v1375_v50 = vadd.f32 %v1374_v41, %v1360_v47  ;;  %v1361_v52 = vmul.f32 %v1344_v16, %v1344_v16  ;;  %v1657_v14 = vadd.f32 %v1656_v13, %v1655_v48  ;;  %v1658_v53 = vpop.f32.mrb[30].mxu1 }
 0x31b   : > { %v1659_v54 = vpop.f32.mrb[31].mxu1 }
 0x31c   : > { %v1325_v55 = vadd.f32 %v1657_v14, %v2463_v6  ;;  %v1660_v56 = vadd.f32 %v1659_v54, %v1658_v53  ;;  %v1376_v57 = vadd.f32 %v1375_v50, %v1361_v52 }
 0x31e   : > { %v1345_v58 = vsub.f32 %v2378_v51, %v1325_v55  ;;  %v1328_v34 = vadd.f32 %v1660_v56, %v2463_v6 }
 0x320   : > { %v1362_v61 = vmul.f32 %v1345_v58, %v1345_v58  ;;  %v1346_v1 = vsub.f32 %v2374_v49, %v1328_v34 }
 0x322   : > { %v1363_v32 = vmul.f32 %v1346_v1, %v1346_v1  ;;  %v1377_v2 = vadd.f32 %v1376_v57, %v1362_v61 }
 0x324   : > { %v1378_v31 = vadd.f32 %v1377_v2, %v1363_v32 }
 0x326   : > { %1379 = vadd.xlane.f32.xlu0 %v1378_v31 }
 0x3b3   : > { %v1380_v3 = vpop.xlane.xlu0 %1379 }
 0x3b4   : > { %v1381_v4 = vrot.slane %v1380_v3, 4 }
 0x3b6   : > { %v1382_v5 = vadd.f32 %v1381_v4, %v1380_v3 }
 0x3b8   : > { %v1383_v29 = vrot.slane %v1382_v5, 2 }
 0x3ba   : > { %v1384_v51 = vadd.f32 %v1383_v29, %v1382_v5 }
 0x3bc   : > { %v1385_v7 = vrot.slane %v1384_v51, 1 }
 0x3be   : > { %v1386_v6 = vadd.f32 %v1385_v7, %v1384_v51 }
 0x3c0   : > { %1661 = vpush %v1386_v6 }
 0x3f1   : > { %s1662_s19 = spop %1661 }
 0x3f2   : > { %s1388_s18 = sadd.f32 %s1662_s19, %s1347_s21 }
 0x3f4   : > { %1390 = sst [smem:[#allocation10]] %s1388_s18  ;;  %s1396_s29 = smul.f32 3.0517578e-05, %s1388_s18 }
 0x3f6   : > { %1678 = sst [smem:[#allocation10]] (%p1703_p0), %s1396_s29 }
 0x3f7   : > { %1916 = shalt.err (!%p1913_p1)
}
 0x3f8   : > { %s1979_s30 = smov [#allocation10]  }
 0x3f9   : > { %1680 = dma.smem_to_hbm (%p1703_p0), %s1979_s30, 16, %s2544_s9, [#allocation4]  }
 0x3fa   : > { %1950 = dma.done.wait (%p1703_p0), [#allocation4], 16  }
 0x3fb   : > { %1952 = vsyncadd (%p1703_p0), [#allocation4], 4294967280 }
 0x3fc   : > { %1411 = sfence }
 0x3fd PF: > { %s2574_s12 = sld [smem:[#allocation16_spill]]  ;;  %s2575_s11 = sld [smem:[#allocation17_spill]] }
 0x3fe   : > { %p24_p11 = scmp.ge.s32.totalorder %s2126_s22, 4   ;;  %s2576_s30 = smov %s1959_s10 }
 0x400   :  { %26 = sbr.rel (!%p24_p11) target bundleno = 11 (0xb), region = 133 }
 0x403   : > { %s2577_s10 = smov %s2574_s12  ;;  %s2578_s12 = smov %s2126_s22 }
 0x407   :  { %1417 = vsyncpa [#allocation3], 1 }
 0x408   :  { %1419 = vsyncpa [#allocation3 + $0x1], 1 }
 0x409   :  { %1420 = vsyncpa [#allocation6], 1 }
 0x40a   :  { %1422 = vsyncpa [#allocation6 + $0x1], 1 }
 0x40b   :  { %1423 = vsyncpa [#allocation9], 1 }
 0x40c   :  { %1424 = vsyncpa [#allocation4], 1 }
 0x40d   :  { %1426 = vsyncpa [#allocation4 + $0x1], 1 }

</bundles_post_ra>
